<compile_context>
chip_gen: v7x
topology: tpu7x:2x2x1
jax: 0.10.0
libtpu: 0.0.40
codegen_flags: <defaults>
</compile_context>

<pallas_src>
import jax
import jax.numpy as jnp
from jax.experimental import pallas as pl
from jax.experimental.pallas import tpu as pltpu

# Model hyper-parameters (from the PyTorch script)
HIDDEN_SIZE = 50
INPUT_SIZE = 1
NUM_LAYERS = 2
OUTPUT_SIZE = 1

# Padded (TPU tile) sizes
B_PAD = 8            # sublane-aligned batch tile
H_PAD = 128          # padded hidden dim (lane width)
W_PAD = 2 * H_PAD    # fused state width  [h0 | h1]
O_PAD = 128          # padded output lane width


def _rnn_kernel(x_ref,     # ((T+1)*B_PAD, H_PAD) f32  time-major x, scalar broadcast over lanes,
                           #                           last time block is a zero dummy
                wih0_ref,  # (1, H_PAD)  f32  W_ih0 row (input_size=1), padded
                b0_ref,    # (1, H_PAD)  f32  b_ih0 + b_hh0, padded
                wbig_ref,  # (W_PAD, W_PAD) f32  fused [[Whh0^T, Wih1^T],[0, Whh1^T]]
                b1_ref,    # (1, H_PAD)  f32  b_ih1 + b_hh1, padded
                wfc_ref,   # (1, H_PAD)  f32  fc weight row, padded
                bfc_ref,   # (1, O_PAD)  f32  fc bias broadcast over lanes
                out_ref):  # (B_PAD, O_PAD) f32
    T = x_ref.shape[0] // B_PAD - 1   # real timesteps (last x block is a dummy)

    # Hoisted (1,128)->(8,128) broadcasts (1 vreg each).
    wih0_b = jnp.broadcast_to(wih0_ref[...], (B_PAD, H_PAD))
    b0_b = jnp.broadcast_to(b0_ref[...], (B_PAD, H_PAD))
    b1_b = jnp.broadcast_to(b1_ref[...], (B_PAD, H_PAD))

    # Prologue (VPU only): h0(0) = tanh(x(0)*Wih0 + b0); initial hidden states are zero.
    h0 = jnp.tanh(x_ref[0:B_PAD, :] * wih0_b + b0_b)
    state = jnp.concatenate([h0, jnp.zeros((B_PAD, H_PAD), jnp.float32)], axis=-1)

    # Fused recurrence: one (8,256)x(256,256) matmul + one tanh per step.
    # T is tiny & static -> fully unrolled.
    # TODO(synk): for large T switch to lax.fori_loop(..., unroll=4) to bound live ranges.
    for t in range(T):
        # xproj(t+1) = x(t+1)*Wih0 + b0  — pure VPU, off the matmul critical path.
        xp = x_ref[(t + 1) * B_PAD:(t + 2) * B_PAD, :] * wih0_b + b0_b
        add = jnp.concatenate([xp, b1_b], axis=-1)          # (8,256): vreg-aligned halves
        state = jnp.tanh(
            jnp.dot(state, wbig_ref[...], preferred_element_type=jnp.float32) + add)

    # fc head: OUTPUT_SIZE=1 -> VPU multiply + lane reduction (no MXU pass, no fc weight tile).
    h1 = state[:, H_PAD:]                                    # h1(T-1), lane-aligned slice
    wfc_b = jnp.broadcast_to(wfc_ref[...], (B_PAD, H_PAD))
    y = jnp.sum(h1 * wfc_b, axis=-1, keepdims=True)          # (8,1)
    out_ref[...] = (jnp.broadcast_to(y, (B_PAD, O_PAD))
                    + jnp.broadcast_to(bfc_ref[...], (B_PAD, O_PAD)))


def _pad_row(v, width):
    out = jnp.zeros((1, width), jnp.float32)
    flat = jnp.asarray(v, jnp.float32).reshape(-1)
    return out.at[0, :flat.shape[0]].set(flat)


def rnn_model_forward(x, params):
    """x: (B, T, INPUT_SIZE) float32, batch-first like PyTorch.  Returns (B, OUTPUT_SIZE)."""
    B, T, I = x.shape
    assert I == INPUT_SIZE
    NB = pl.cdiv(B, B_PAD)
    B_total = NB * B_PAD

    # Time-major scalar input, zero-padded batch, one trailing zero dummy timestep,
    # value broadcast across the 128-lane axis (keeps the kernel pure (8,128) VPU math).
    xsc = jnp.zeros((B_total, T + 1), jnp.float32).at[:B, :T].set(
        x[:, :, 0].astype(jnp.float32))
    x_tm = xsc.reshape(NB, B_PAD, T + 1).transpose(0, 2, 1)          # (NB, T+1, B_PAD)
    x_flat = jnp.broadcast_to(
        x_tm[..., None], (NB, T + 1, B_PAD, H_PAD)).reshape((NB * (T + 1) * B_PAD, H_PAD))

    H = HIDDEN_SIZE
    wih0 = _pad_row(params["w_ih0"].T, H_PAD)                        # (1, H_PAD)
    b0 = _pad_row(params["b_ih0"] + params["b_hh0"], H_PAD)
    b1 = _pad_row(params["b_ih1"] + params["b_hh1"], H_PAD)

    # Fused recurrent weight: [[Whh0^T, Wih1^T], [0, Whh1^T]] at row/col block offsets {0, H_PAD}.
    wbig = jnp.zeros((W_PAD, W_PAD), jnp.float32)
    wbig = wbig.at[:H, :H].set(params["w_hh0"].T.astype(jnp.float32))
    wbig = wbig.at[:H, H_PAD:H_PAD + H].set(params["w_ih1"].T.astype(jnp.float32))
    wbig = wbig.at[H_PAD:H_PAD + H, H_PAD:H_PAD + H].set(params["w_hh1"].T.astype(jnp.float32))

    wfc = _pad_row(params["w_fc"], H_PAD)                            # (1, H_PAD)
    bfc = jnp.full((1, O_PAD), params["b_fc"][0], jnp.float32)

    row_blk = (T + 1) * B_PAD
    const = lambda b: (0, 0)   # weights: loaded once, resident across batch tiles

    out_pad = pl.pallas_call(
        _rnn_kernel,
        out_shape=jax.ShapeDtypeStruct((B_total, O_PAD), jnp.float32),
        grid=(NB,),
        in_specs=[
            pl.BlockSpec((row_blk, H_PAD), lambda b: (b, 0)),   # x, per batch tile
            pl.BlockSpec((1, H_PAD), const),                    # wih0 row
            pl.BlockSpec((1, H_PAD), const),                    # b0
            pl.BlockSpec((W_PAD, W_PAD), const),                # fused W_big
            pl.BlockSpec((1, H_PAD), const),                    # b1
            pl.BlockSpec((1, H_PAD), const),                    # fc weight row
            pl.BlockSpec((1, O_PAD), const),                    # fc bias
        ],
        out_specs=pl.BlockSpec((B_PAD, O_PAD), lambda b: (b, 0)),
        compiler_params=pltpu.CompilerParams(dimension_semantics=("parallel",)),
    )(x_flat, wih0, b0, wbig, b1, wfc, bfc)

    return out_pad[:B, :OUTPUT_SIZE]


def rnn_model_reference(x, params):
    """Pure-JAX reference matching nn.RNN(batch_first=True, num_layers=2) + Linear."""
    B, T, _ = x.shape
    h0 = jnp.zeros((B, HIDDEN_SIZE), jnp.float32)
    h1 = jnp.zeros((B, HIDDEN_SIZE), jnp.float32)
    for t in range(T):
        xt = x[:, t, :]
        h0 = jnp.tanh(xt @ params["w_ih0"].T + params["b_ih0"]
                      + h0 @ params["w_hh0"].T + params["b_hh0"])
        h1 = jnp.tanh(h0 @ params["w_ih1"].T + params["b_ih1"]
                      + h1 @ params["w_hh1"].T + params["b_hh1"])
    return h1 @ params["w_fc"].T + params["b_fc"]


def init_params(key):
    """Deterministic init with PyTorch-style uniform(-1/sqrt(H), 1/sqrt(H)) bounds."""
    ks = jax.random.split(key, 10)
    bound = 1.0 / jnp.sqrt(jnp.float32(HIDDEN_SIZE))
    u = lambda k, shape: jax.random.uniform(k, shape, jnp.float32, -bound, bound)
    return {
        "w_ih0": u(ks[0], (HIDDEN_SIZE, INPUT_SIZE)),
        "w_hh0": u(ks[1], (HIDDEN_SIZE, HIDDEN_SIZE)),
        "b_ih0": u(ks[2], (HIDDEN_SIZE,)),
        "b_hh0": u(ks[3], (HIDDEN_SIZE,)),
        "w_ih1": u(ks[4], (HIDDEN_SIZE, HIDDEN_SIZE)),
        "w_hh1": u(ks[5], (HIDDEN_SIZE, HIDDEN_SIZE)),
        "b_ih1": u(ks[6], (HIDDEN_SIZE,)),
        "b_hh1": u(ks[7], (HIDDEN_SIZE,)),
        "w_fc": u(ks[8], (OUTPUT_SIZE, HIDDEN_SIZE)),
        "b_fc": u(ks[9], (OUTPUT_SIZE,)),
    }


if __name__ == "__main__":
    key = jax.random.PRNGKey(0)
    k_param, k_x = jax.random.split(key)
    params = init_params(k_param)

    B, T = 2, 8
    x = jax.random.normal(k_x, (B, T, INPUT_SIZE), jnp.float32)

    out = jax.block_until_ready(rnn_model_forward(x, params))
    ref = rnn_model_reference(x, params)
    assert out.shape == (B, OUTPUT_SIZE)
    # All-f32 recurrence; tolerance covers MXU default-precision matmul passes.
    if not bool(jnp.allclose(out, ref, atol=1e-2, rtol=1e-2)):
        raise AssertionError(f"mismatch: kernel={out} ref={ref}")
    print("KERNEL_OK")
</pallas_src>

<mosaic_0001>
module attributes {stable_mosaic.version = 11 : i64} {
  func.func @_rnn_kernel(%arg0: i32, %arg1: memref<72x128xf32, #tpu.memory_space<vmem>>, %arg2: memref<1x128xf32, #tpu.memory_space<vmem>>, %arg3: memref<1x128xf32, #tpu.memory_space<vmem>>, %arg4: memref<256x256xf32, #tpu.memory_space<vmem>>, %arg5: memref<1x128xf32, #tpu.memory_space<vmem>>, %arg6: memref<1x128xf32, #tpu.memory_space<vmem>>, %arg7: memref<1x128xf32, #tpu.memory_space<vmem>>, %arg8: memref<8x128xf32, #tpu.memory_space<vmem>>) attributes {dimension_semantics = [#tpu.dimension_semantics<parallel>], iteration_bounds = array<i64: 1>, scalar_prefetch = 0 : i64, scratch_operands = 0 : i64, tpu.core_type = #tpu.core_type<tc>, window_params = [{transform_indices = @transform_0, window_bounds = array<i64: 72, 128>}, {pipeline_mode = #tpu.pipeline_mode<synchronous>, transform_indices = @transform_1, window_bounds = array<i64: 1, 128>}, {pipeline_mode = #tpu.pipeline_mode<synchronous>, transform_indices = @transform_2, window_bounds = array<i64: 1, 128>}, {pipeline_mode = #tpu.pipeline_mode<synchronous>, transform_indices = @transform_3, window_bounds = array<i64: 256, 256>}, {pipeline_mode = #tpu.pipeline_mode<synchronous>, transform_indices = @transform_4, window_bounds = array<i64: 1, 128>}, {pipeline_mode = #tpu.pipeline_mode<synchronous>, transform_indices = @transform_5, window_bounds = array<i64: 1, 128>}, {pipeline_mode = #tpu.pipeline_mode<synchronous>, transform_indices = @transform_6, window_bounds = array<i64: 1, 128>}, {transform_indices = @transform_7, window_bounds = array<i64: 8, 128>}]} {
    %c0 = arith.constant 0 : index
    %c0_0 = arith.constant 0 : index
    %0 = vector.load %arg2[%c0, %c0_0] : memref<1x128xf32, #tpu.memory_space<vmem>>, vector<1x128xf32>
    %1 = vector.shape_cast %0 : vector<1x128xf32> to vector<1x128xf32>
    %2 = vector.broadcast %1 : vector<1x128xf32> to vector<8x128xf32>
    %c0_1 = arith.constant 0 : index
    %c0_2 = arith.constant 0 : index
    %3 = vector.load %arg3[%c0_1, %c0_2] : memref<1x128xf32, #tpu.memory_space<vmem>>, vector<1x128xf32>
    %4 = vector.shape_cast %3 : vector<1x128xf32> to vector<1x128xf32>
    %5 = vector.broadcast %4 : vector<1x128xf32> to vector<8x128xf32>
    %c0_3 = arith.constant 0 : index
    %c0_4 = arith.constant 0 : index
    %6 = vector.load %arg5[%c0_3, %c0_4] : memref<1x128xf32, #tpu.memory_space<vmem>>, vector<1x128xf32>
    %7 = vector.shape_cast %6 : vector<1x128xf32> to vector<1x128xf32>
    %8 = vector.broadcast %7 : vector<1x128xf32> to vector<8x128xf32>
    %c0_5 = arith.constant 0 : index
    %c0_6 = arith.constant 0 : index
    %9 = vector.load %arg1[%c0_5, %c0_6] : memref<72x128xf32, #tpu.memory_space<vmem>>, vector<8x128xf32>
    %10 = arith.mulf %9, %2 : vector<8x128xf32>
    %11 = arith.addf %10, %5 : vector<8x128xf32>
    %12 = math.tanh %11 : vector<8x128xf32>
    %cst = arith.constant 0.000000e+00 : f32
    %13 = vector.broadcast %cst : f32 to vector<8x128xf32>
    %14 = tpu.concatenate %12, %13 in 1 : vector<8x128xf32>, vector<8x128xf32> -> vector<8x256xf32>
    %c8 = arith.constant 8 : index
    %c0_7 = arith.constant 0 : index
    %15 = vector.load %arg1[%c8, %c0_7] : memref<72x128xf32, #tpu.memory_space<vmem>>, vector<8x128xf32>
    %16 = arith.mulf %15, %2 : vector<8x128xf32>
    %17 = arith.addf %16, %5 : vector<8x128xf32>
    %18 = tpu.concatenate %17, %8 in 1 : vector<8x128xf32>, vector<8x128xf32> -> vector<8x256xf32>
    %c0_8 = arith.constant 0 : index
    %c0_9 = arith.constant 0 : index
    %19 = vector.load %arg4[%c0_8, %c0_9] : memref<256x256xf32, #tpu.memory_space<vmem>>, vector<256x256xf32>
    %cst_10 = arith.constant dense<0.000000e+00> : vector<8x256xf32>
    %20 = tpu.matmul %14, %19, %cst_10 {dimension_numbers = #tpu.dot_dimension_numbers<[1], [0], [0], [1], [0, 0, 1, 1], [], []>} : vector<8x256xf32>, vector<256x256xf32>, vector<8x256xf32> -> vector<8x256xf32>
    %21 = arith.addf %20, %18 : vector<8x256xf32>
    %22 = math.tanh %21 : vector<8x256xf32>
    %c16 = arith.constant 16 : index
    %c0_11 = arith.constant 0 : index
    %23 = vector.load %arg1[%c16, %c0_11] : memref<72x128xf32, #tpu.memory_space<vmem>>, vector<8x128xf32>
    %24 = arith.mulf %23, %2 : vector<8x128xf32>
    %25 = arith.addf %24, %5 : vector<8x128xf32>
    %26 = tpu.concatenate %25, %8 in 1 : vector<8x128xf32>, vector<8x128xf32> -> vector<8x256xf32>
    %c0_12 = arith.constant 0 : index
    %c0_13 = arith.constant 0 : index
    %27 = vector.load %arg4[%c0_12, %c0_13] : memref<256x256xf32, #tpu.memory_space<vmem>>, vector<256x256xf32>
    %cst_14 = arith.constant dense<0.000000e+00> : vector<8x256xf32>
    %28 = tpu.matmul %22, %27, %cst_14 {dimension_numbers = #tpu.dot_dimension_numbers<[1], [0], [0], [1], [0, 0, 1, 1], [], []>} : vector<8x256xf32>, vector<256x256xf32>, vector<8x256xf32> -> vector<8x256xf32>
    %29 = arith.addf %28, %26 : vector<8x256xf32>
    %30 = math.tanh %29 : vector<8x256xf32>
    %c24 = arith.constant 24 : index
    %c0_15 = arith.constant 0 : index
    %31 = vector.load %arg1[%c24, %c0_15] : memref<72x128xf32, #tpu.memory_space<vmem>>, vector<8x128xf32>
    %32 = arith.mulf %31, %2 : vector<8x128xf32>
    %33 = arith.addf %32, %5 : vector<8x128xf32>
    %34 = tpu.concatenate %33, %8 in 1 : vector<8x128xf32>, vector<8x128xf32> -> vector<8x256xf32>
    %c0_16 = arith.constant 0 : index
    %c0_17 = arith.constant 0 : index
    %35 = vector.load %arg4[%c0_16, %c0_17] : memref<256x256xf32, #tpu.memory_space<vmem>>, vector<256x256xf32>
    %cst_18 = arith.constant dense<0.000000e+00> : vector<8x256xf32>
    %36 = tpu.matmul %30, %35, %cst_18 {dimension_numbers = #tpu.dot_dimension_numbers<[1], [0], [0], [1], [0, 0, 1, 1], [], []>} : vector<8x256xf32>, vector<256x256xf32>, vector<8x256xf32> -> vector<8x256xf32>
    %37 = arith.addf %36, %34 : vector<8x256xf32>
    %38 = math.tanh %37 : vector<8x256xf32>
    %c32 = arith.constant 32 : index
    %c0_19 = arith.constant 0 : index
    %39 = vector.load %arg1[%c32, %c0_19] : memref<72x128xf32, #tpu.memory_space<vmem>>, vector<8x128xf32>
    %40 = arith.mulf %39, %2 : vector<8x128xf32>
    %41 = arith.addf %40, %5 : vector<8x128xf32>
    %42 = tpu.concatenate %41, %8 in 1 : vector<8x128xf32>, vector<8x128xf32> -> vector<8x256xf32>
    %c0_20 = arith.constant 0 : index
    %c0_21 = arith.constant 0 : index
    %43 = vector.load %arg4[%c0_20, %c0_21] : memref<256x256xf32, #tpu.memory_space<vmem>>, vector<256x256xf32>
    %cst_22 = arith.constant dense<0.000000e+00> : vector<8x256xf32>
    %44 = tpu.matmul %38, %43, %cst_22 {dimension_numbers = #tpu.dot_dimension_numbers<[1], [0], [0], [1], [0, 0, 1, 1], [], []>} : vector<8x256xf32>, vector<256x256xf32>, vector<8x256xf32> -> vector<8x256xf32>
    %45 = arith.addf %44, %42 : vector<8x256xf32>
    %46 = math.tanh %45 : vector<8x256xf32>
    %c40 = arith.constant 40 : index
    %c0_23 = arith.constant 0 : index
    %47 = vector.load %arg1[%c40, %c0_23] : memref<72x128xf32, #tpu.memory_space<vmem>>, vector<8x128xf32>
    %48 = arith.mulf %47, %2 : vector<8x128xf32>
    %49 = arith.addf %48, %5 : vector<8x128xf32>
    %50 = tpu.concatenate %49, %8 in 1 : vector<8x128xf32>, vector<8x128xf32> -> vector<8x256xf32>
    %c0_24 = arith.constant 0 : index
    %c0_25 = arith.constant 0 : index
    %51 = vector.load %arg4[%c0_24, %c0_25] : memref<256x256xf32, #tpu.memory_space<vmem>>, vector<256x256xf32>
    %cst_26 = arith.constant dense<0.000000e+00> : vector<8x256xf32>
    %52 = tpu.matmul %46, %51, %cst_26 {dimension_numbers = #tpu.dot_dimension_numbers<[1], [0], [0], [1], [0, 0, 1, 1], [], []>} : vector<8x256xf32>, vector<256x256xf32>, vector<8x256xf32> -> vector<8x256xf32>
    %53 = arith.addf %52, %50 : vector<8x256xf32>
    %54 = math.tanh %53 : vector<8x256xf32>
    %c48 = arith.constant 48 : index
    %c0_27 = arith.constant 0 : index
    %55 = vector.load %arg1[%c48, %c0_27] : memref<72x128xf32, #tpu.memory_space<vmem>>, vector<8x128xf32>
    %56 = arith.mulf %55, %2 : vector<8x128xf32>
    %57 = arith.addf %56, %5 : vector<8x128xf32>
    %58 = tpu.concatenate %57, %8 in 1 : vector<8x128xf32>, vector<8x128xf32> -> vector<8x256xf32>
    %c0_28 = arith.constant 0 : index
    %c0_29 = arith.constant 0 : index
    %59 = vector.load %arg4[%c0_28, %c0_29] : memref<256x256xf32, #tpu.memory_space<vmem>>, vector<256x256xf32>
    %cst_30 = arith.constant dense<0.000000e+00> : vector<8x256xf32>
    %60 = tpu.matmul %54, %59, %cst_30 {dimension_numbers = #tpu.dot_dimension_numbers<[1], [0], [0], [1], [0, 0, 1, 1], [], []>} : vector<8x256xf32>, vector<256x256xf32>, vector<8x256xf32> -> vector<8x256xf32>
    %61 = arith.addf %60, %58 : vector<8x256xf32>
    %62 = math.tanh %61 : vector<8x256xf32>
    %c56 = arith.constant 56 : index
    %c0_31 = arith.constant 0 : index
    %63 = vector.load %arg1[%c56, %c0_31] : memref<72x128xf32, #tpu.memory_space<vmem>>, vector<8x128xf32>
    %64 = arith.mulf %63, %2 : vector<8x128xf32>
    %65 = arith.addf %64, %5 : vector<8x128xf32>
    %66 = tpu.concatenate %65, %8 in 1 : vector<8x128xf32>, vector<8x128xf32> -> vector<8x256xf32>
    %c0_32 = arith.constant 0 : index
    %c0_33 = arith.constant 0 : index
    %67 = vector.load %arg4[%c0_32, %c0_33] : memref<256x256xf32, #tpu.memory_space<vmem>>, vector<256x256xf32>
    %cst_34 = arith.constant dense<0.000000e+00> : vector<8x256xf32>
    %68 = tpu.matmul %62, %67, %cst_34 {dimension_numbers = #tpu.dot_dimension_numbers<[1], [0], [0], [1], [0, 0, 1, 1], [], []>} : vector<8x256xf32>, vector<256x256xf32>, vector<8x256xf32> -> vector<8x256xf32>
    %69 = arith.addf %68, %66 : vector<8x256xf32>
    %70 = math.tanh %69 : vector<8x256xf32>
    %c64 = arith.constant 64 : index
    %c0_35 = arith.constant 0 : index
    %71 = vector.load %arg1[%c64, %c0_35] : memref<72x128xf32, #tpu.memory_space<vmem>>, vector<8x128xf32>
    %72 = arith.mulf %71, %2 : vector<8x128xf32>
    %73 = arith.addf %72, %5 : vector<8x128xf32>
    %74 = tpu.concatenate %73, %8 in 1 : vector<8x128xf32>, vector<8x128xf32> -> vector<8x256xf32>
    %c0_36 = arith.constant 0 : index
    %c0_37 = arith.constant 0 : index
    %75 = vector.load %arg4[%c0_36, %c0_37] : memref<256x256xf32, #tpu.memory_space<vmem>>, vector<256x256xf32>
    %cst_38 = arith.constant dense<0.000000e+00> : vector<8x256xf32>
    %76 = tpu.matmul %70, %75, %cst_38 {dimension_numbers = #tpu.dot_dimension_numbers<[1], [0], [0], [1], [0, 0, 1, 1], [], []>} : vector<8x256xf32>, vector<256x256xf32>, vector<8x256xf32> -> vector<8x256xf32>
    %77 = arith.addf %76, %74 : vector<8x256xf32>
    %78 = math.tanh %77 : vector<8x256xf32>
    %79 = vector.extract_strided_slice %78 {offsets = [0, 128], sizes = [8, 128], strides = [1, 1]} : vector<8x256xf32> to vector<8x128xf32>
    %c0_39 = arith.constant 0 : index
    %c0_40 = arith.constant 0 : index
    %80 = vector.load %arg6[%c0_39, %c0_40] : memref<1x128xf32, #tpu.memory_space<vmem>>, vector<1x128xf32>
    %81 = vector.shape_cast %80 : vector<1x128xf32> to vector<1x128xf32>
    %82 = vector.broadcast %81 : vector<1x128xf32> to vector<8x128xf32>
    %83 = arith.mulf %79, %82 : vector<8x128xf32>
    %cst_41 = arith.constant dense<0.000000e+00> : vector<8xf32>
    %84 = vector.multi_reduction <add>, %83, %cst_41 [1] : vector<8x128xf32> to vector<8xf32>
    %85 = vector.shape_cast %84 : vector<8xf32> to vector<8x1xf32>
    %86 = vector.shape_cast %85 : vector<8x1xf32> to vector<8x1xf32>
    %87 = vector.broadcast %86 : vector<8x1xf32> to vector<8x128xf32>
    %c0_42 = arith.constant 0 : index
    %c0_43 = arith.constant 0 : index
    %88 = vector.load %arg7[%c0_42, %c0_43] : memref<1x128xf32, #tpu.memory_space<vmem>>, vector<1x128xf32>
    %89 = vector.shape_cast %88 : vector<1x128xf32> to vector<1x128xf32>
    %90 = vector.broadcast %89 : vector<1x128xf32> to vector<8x128xf32>
    %91 = arith.addf %87, %90 : vector<8x128xf32>
    %c0_44 = arith.constant 0 : index
    %c0_45 = arith.constant 0 : index
    %92 = vector.load %arg8[%c0_44, %c0_45] : memref<8x128xf32, #tpu.memory_space<vmem>>, vector<8x128xf32>
    tpu.vector_store %arg8[%c0_44, %c0_45], %91 {strides = array<i32>} : memref<8x128xf32, #tpu.memory_space<vmem>>, vector<8x128xf32>,
    return
  }
  func.func @transform_0(%arg0: i32) -> (i32, i32) {
    %c0_i32 = arith.constant 0 : i32
    %c0_i32_0 = arith.constant 0 : i32
    return %arg0, %c0_i32 : i32, i32
  }
  func.func @transform_1(%arg0: i32) -> (i32, i32) {
    %c0_i32 = arith.constant 0 : i32
    %c0_i32_0 = arith.constant 0 : i32
    %c0_i32_1 = arith.constant 0 : i32
    return %c0_i32, %c0_i32_0 : i32, i32
  }
  func.func @transform_2(%arg0: i32) -> (i32, i32) {
    %c0_i32 = arith.constant 0 : i32
    %c0_i32_0 = arith.constant 0 : i32
    %c0_i32_1 = arith.constant 0 : i32
    return %c0_i32, %c0_i32_0 : i32, i32
  }
  func.func @transform_3(%arg0: i32) -> (i32, i32) {
    %c0_i32 = arith.constant 0 : i32
    %c0_i32_0 = arith.constant 0 : i32
    %c0_i32_1 = arith.constant 0 : i32
    return %c0_i32, %c0_i32_0 : i32, i32
  }
  func.func @transform_4(%arg0: i32) -> (i32, i32) {
    %c0_i32 = arith.constant 0 : i32
    %c0_i32_0 = arith.constant 0 : i32
    %c0_i32_1 = arith.constant 0 : i32
    return %c0_i32, %c0_i32_0 : i32, i32
  }
  func.func @transform_5(%arg0: i32) -> (i32, i32) {
    %c0_i32 = arith.constant 0 : i32
    %c0_i32_0 = arith.constant 0 : i32
    %c0_i32_1 = arith.constant 0 : i32
    return %c0_i32, %c0_i32_0 : i32, i32
  }
  func.func @transform_6(%arg0: i32) -> (i32, i32) {
    %c0_i32 = arith.constant 0 : i32
    %c0_i32_0 = arith.constant 0 : i32
    %c0_i32_1 = arith.constant 0 : i32
    return %c0_i32, %c0_i32_0 : i32, i32
  }
  func.func @transform_7(%arg0: i32) -> (i32, i32) {
    %c0_i32 = arith.constant 0 : i32
    %c0_i32_0 = arith.constant 0 : i32
    return %arg0, %c0_i32 : i32, i32
  }
}

</mosaic_0001>

<bundles_post_ra>
// kernel: tpu_custom_call.1
= control target key start
LH: loop header
LB: loop body
LE: loop exit
PB: predicated region body
PF: predicated region fallthrough
CT: control target
= control target key end

     0   :  { %12 = vsyncpa [#allocation3], 0  ;;  %s1860_s0 = inlined_call_operand.hbm [shape: f32[72,128], index: 0, kind: input, shape index: {}]   ;;  %s1861_s1 = inlined_call_operand.vmem [shape: f32[1,128], index: 1, kind: input, shape index: {}]   ;;  %s1862_s2 = inlined_call_operand.vmem [shape: f32[1,128], index: 2, kind: input, shape index: {}]   ;;  %s1863_s3 = inlined_call_operand.hbm [shape: f32[256,256], index: 3, kind: input, shape index: {}]   ;;  %s1864_s4 = inlined_call_operand.vmem [shape: f32[1,128], index: 4, kind: input, shape index: {}]   ;;  %s1865_s5 = inlined_call_operand.vmem [shape: f32[1,128], index: 5, kind: input, shape index: {}]   ;;  %s1866_s6 = inlined_call_operand.vmem [shape: f32[1,128], index: 6, kind: input, shape index: {}]   ;;  %s1867_s7 = inlined_call_operand.hbm [shape: f32[8,128], index: 7, kind: output, shape index: {}]  }
   0x1   :  { %13 = vsyncpa [#allocation6], 0 }
   0x2   :  { %14 = vsyncpa [#allocation4], 0  ;;  %s1411_s24 = smov [#allocation2]   ;;  %s1339_s28 = scalar_lea.hbm %s1860_s0, 1152 }
   0x3   :  { %s20_s25 = sshll.u32 %s1411_s24, 4  ;;  %p1340_p0 = scmp.ne.s32.totalorder %s1860_s0, %s1339_s28  ;;  %s21_s25 = int_to_ptr.vmem [resolvable:$true] %s20_s25 }
   0x4   :  { %p1343_p1 = scmp.lt.u32.totalorder %s1339_s28, %s1860_s0 }
   0x6   :  { %p1345_p2 = pnand %p1343_p1, %p1340_p0 }
   0x8   :  { %1348 = shalt.err (!%p1345_p2)
}
   0x9   :  { %s1349_s10 = scalar_lea.vmem %s21_s25, 1152  ;;  %p1354_p4 = scmp.lt.s32.totalorder %s21_s25, %s21_s25 }
   0xa   :  { %p1350_p3 = scmp.ne.s32.totalorder %s21_s25, %s1349_s10  ;;  %p1355_p5 = scmp.lt.s32.totalorder %s1349_s10, %s1349_s10 }
   0xc   :  { %p1356_p6 = por %p1355_p5, %p1354_p4 }
   0xe   :  { %p1357_p7 = pnand %p1356_p6, %p1350_p3 }
  0x10   :  { %1360 = shalt.err (!%p1357_p7)
}
  0x11   :  { %s1412_s11 = smov 128   ;;  %s1413_s12 = smov 8  }
  0x12   :  { %26 = dma.hbm_to_vmem [thread:$0]  %s1860_s0, 1152, %s21_s25, [#allocation3], %s1412_s11, %s1412_s11, %s1413_s12  }
  0x13   :  { %s1414_s15 = smov [#allocation5]   ;;  %s1361_s19 = scalar_lea.hbm %s1863_s3, 8192 }
  0x14   :  { %s36_s16 = sshll.u32 %s1414_s15, 4  ;;  %p1362_p8 = scmp.ne.s32.totalorder %s1863_s3, %s1361_s19  ;;  %s37_s16 = int_to_ptr.vmem [resolvable:$true] %s36_s16 }
  0x15   :  { %p1365_p9 = scmp.lt.u32.totalorder %s1361_s19, %s1863_s3 }
  0x17   :  { %p1367_p10 = pnand %p1365_p9, %p1362_p8 }
  0x19   :  { %1370 = shalt.err (!%p1367_p10)
}
  0x1a   :  { %s1371_s24 = scalar_lea.vmem %s37_s16, 8192  ;;  %p1376_p12 = scmp.lt.s32.totalorder %s37_s16, %s37_s16 }
  0x1b   :  { %p1372_p11 = scmp.ne.s32.totalorder %s37_s16, %s1371_s24  ;;  %p1377_p13 = scmp.lt.s32.totalorder %s1371_s24, %s1371_s24 }
  0x1d   :  { %p1378_p0 = por %p1377_p13, %p1376_p12 }
  0x1f   :  { %p1379_p1 = pnand %p1378_p0, %p1372_p11 }
  0x21   :  { %1382 = shalt.err (!%p1379_p1)
}
  0x22   :  { %s1415_s0 = smov 256   ;;  %s1416_s25 = smov 16  }
  0x23   :  { %42 = dma.hbm_to_vmem [thread:$0]  %s1863_s3, 8192, %s37_s16, [#allocation6], %s1415_s0, %s1415_s0, %s1416_s25  }
  0x24   :  { %1405 = dma.done.wait [#allocation3], 1152  }
  0x25   :  { %1406 = vsyncadd [#allocation3], 4294966144 }
  0x26   :  { %1407 = dma.done.wait [#allocation6], 8192  }
  0x27   :  { %1408 = vsyncadd [#allocation6], 4294959104  ;;  %v1417_v0 = vmov 0.0   ;;  %v84_v1 = vld [vmem:[#allocation5 + $0x8] sm:$0xff]  ;;  %v86_v2 = vld [vmem:[#allocation5 + $0x18] sm:$0xff]  ;;  %s1418_s11 = smov [#allocation7]  }
  0x28   :  { %211 = vmatprep.mubr.f32.mxu0 %v1417_v0  ;;  %v83_v3 = vld [vmem:[#allocation5] sm:$0xff]  ;;  %v1483_v4 = vpack.c.bf16 %v86_v2, %v84_v1  ;;  %v85_v5 = vld [vmem:[#allocation5 + $0x10] sm:$0xff]  ;;  %v88_v6 = vld [vmem:[#allocation5 + $0x28] sm:$0xff]  ;;  %s772_s12 = sshll.u32 %s1418_s11, 4  ;;  %s773_s12 = int_to_ptr.vmem [resolvable:$true] %s772_s12 }
  0x29   :  { %v90_v7 = vld [vmem:[#allocation5 + $0x38] sm:$0xff]  ;;  %v1485_v8 = vpack.c.bf16 %v85_v5, %v83_v3  ;;  %v87_v10 = vld [vmem:[#allocation5 + $0x20] sm:$0xff]  ;;  %v89_v11 = vld [vmem:[#allocation5 + $0x30] sm:$0xff]  ;;  %s1383_s13 = scalar_lea.vmem %s773_s12, 128  ;;  %p1388_p3 = scmp.lt.s32.totalorder %s773_s12, %s773_s12 }
  0x2a   :  { %v1487_v9 = vpack.c.bf16 %v90_v7, %v88_v6  ;;  %v92_v12 = vld [vmem:[#allocation5 + $0x48] sm:$0xff]  ;;  %788 = vmatprep.subr.bf16.mxu0 %v1483_v4  ;;  %v94_v13 = vld [vmem:[#allocation5 + $0x58] sm:$0xff]  ;;  %852 = vmatprep.subr.bf16.mxu1 %v1483_v4  ;;  %v1492_v14 = vpack.c.bf16 %v89_v11, %v87_v10  ;;  %v91_v16 = vld [vmem:[#allocation5 + $0x40] sm:$0xff]  ;;  %p1384_p2 = scmp.ne.s32.totalorder %s773_s12, %s1383_s13  ;;  %p1389_p4 = scmp.lt.s32.totalorder %s1383_s13, %s1383_s13 }
  0x2b   :  { %790 = vmatpush1.bf16.msra.mxu0 %v1485_v8  ;;  %854 = vmatpush1.bf16.msra.mxu1 %v1485_v8  ;;  %v1496_v15 = vpack.c.bf16 %v94_v13, %v92_v12  ;;  %v93_v17 = vld [vmem:[#allocation5 + $0x50] sm:$0xff]  ;;  %v96_v18 = vld [vmem:[#allocation5 + $0x68] sm:$0xff]  ;;  %v98_v19 = vld [vmem:[#allocation5 + $0x78] sm:$0xff] }
  0x2c   :  { %792 = vmatprep.subr.bf16.mxu0 %v1487_v9  ;;  %856 = vmatprep.subr.bf16.mxu1 %v1487_v9  ;;  %v1500_v20 = vpack.c.bf16 %v93_v17, %v91_v16  ;;  %v1504_v21 = vpack.c.bf16 %v98_v19, %v96_v18  ;;  %v95_v22 = vld [vmem:[#allocation5 + $0x60] sm:$0xff]  ;;  %v97_v23 = vld [vmem:[#allocation5 + $0x70] sm:$0xff]  ;;  %v100_v24 = vld [vmem:[#allocation5 + $0x88] sm:$0xff]  ;;  %p1390_p5 = por %p1389_p4, %p1388_p3 }
  0x2d   :  { %v102_v25 = vld [vmem:[#allocation5 + $0x98] sm:$0xff]  ;;  %v1508_v26 = vpack.c.bf16 %v97_v23, %v95_v22  ;;  %v99_v28 = vld [vmem:[#allocation5 + $0x80] sm:$0xff]  ;;  %v101_v29 = vld [vmem:[#allocation5 + $0x90] sm:$0xff] }
  0x2e   :  { %v1512_v27 = vpack.c.bf16 %v102_v25, %v100_v24  ;;  %v104_v30 = vld [vmem:[#allocation5 + $0xa8] sm:$0xff]  ;;  %v106_v31 = vld [vmem:[#allocation5 + $0xb8] sm:$0xff]  ;;  %v1516_v32 = vpack.c.bf16 %v101_v29, %v99_v28  ;;  %v103_v34 = vld [vmem:[#allocation5 + $0xa0] sm:$0xff]  ;;  %p1391_p6 = pnand %p1390_p5, %p1384_p2 }
  0x2f   :  { %794 = vmatpush1.bf16.msra.mxu0 %v1492_v14  ;;  %858 = vmatpush1.bf16.msra.mxu1 %v1492_v14  ;;  %v1520_v33 = vpack.c.bf16 %v106_v31, %v104_v30  ;;  %v105_v35 = vld [vmem:[#allocation5 + $0xb0] sm:$0xff]  ;;  %v108_v36 = vld [vmem:[#allocation5 + $0xc8] sm:$0xff]  ;;  %v110_v37 = vld [vmem:[#allocation5 + $0xd8] sm:$0xff] }
  0x30   :  { %796 = vmatprep.subr.bf16.mxu0 %v1496_v15  ;;  %860 = vmatprep.subr.bf16.mxu1 %v1496_v15  ;;  %v1524_v38 = vpack.c.bf16 %v105_v35, %v103_v34  ;;  %v1528_v39 = vpack.c.bf16 %v110_v37, %v108_v36  ;;  %v107_v40 = vld [vmem:[#allocation5 + $0xc0] sm:$0xff]  ;;  %v109_v41 = vld [vmem:[#allocation5 + $0xd0] sm:$0xff]  ;;  %v112_v42 = vld [vmem:[#allocation5 + $0xe8] sm:$0xff] }
  0x31   :  { %v114_v43 = vld [vmem:[#allocation5 + $0xf8] sm:$0xff]  ;;  %v1532_v44 = vpack.c.bf16 %v109_v41, %v107_v40  ;;  %v111_v46 = vld [vmem:[#allocation5 + $0xe0] sm:$0xff]  ;;  %v113_v47 = vld [vmem:[#allocation5 + $0xf0] sm:$0xff] }
  0x32   :  { %v1536_v45 = vpack.c.bf16 %v114_v43, %v112_v42  ;;  %v116_v48 = vld [vmem:[#allocation5 + $0x108] sm:$0xff]  ;;  %v118_v49 = vld [vmem:[#allocation5 + $0x118] sm:$0xff]  ;;  %v1540_v50 = vpack.c.bf16 %v113_v47, %v111_v46  ;;  %v115_v52 = vld [vmem:[#allocation5 + $0x100] sm:$0xff] }
  0x33   :  { %798 = vmatpush1.bf16.msra.mxu0 %v1500_v20  ;;  %862 = vmatpush1.bf16.msra.mxu1 %v1500_v20  ;;  %v1544_v51 = vpack.c.bf16 %v118_v49, %v116_v48  ;;  %v117_v53 = vld [vmem:[#allocation5 + $0x110] sm:$0xff]  ;;  %v120_v54 = vld [vmem:[#allocation5 + $0x128] sm:$0xff]  ;;  %v122_v55 = vld [vmem:[#allocation5 + $0x138] sm:$0xff] }
  0x34   :  { %800 = vmatprep.subr.bf16.mxu0 %v1504_v21  ;;  %864 = vmatprep.subr.bf16.mxu1 %v1504_v21  ;;  %v1548_v56 = vpack.c.bf16 %v117_v53, %v115_v52  ;;  %v1552_v57 = vpack.c.bf16 %v122_v55, %v120_v54  ;;  %v119_v58 = vld [vmem:[#allocation5 + $0x120] sm:$0xff]  ;;  %v121_v59 = vld [vmem:[#allocation5 + $0x130] sm:$0xff]  ;;  %v124_v60 = vld [vmem:[#allocation5 + $0x148] sm:$0xff] }
  0x35   :  { %v126_v61 = vld [vmem:[#allocation5 + $0x158] sm:$0xff]  ;;  %v1556_v62 = vpack.c.bf16 %v121_v59, %v119_v58  ;;  %v123_v0 = vld [vmem:[#allocation5 + $0x140] sm:$0xff]  ;;  %v125_v1 = vld [vmem:[#allocation5 + $0x150] sm:$0xff] }
  0x36   :  { %v1560_v63 = vpack.c.bf16 %v126_v61, %v124_v60  ;;  %v128_v2 = vld [vmem:[#allocation5 + $0x168] sm:$0xff]  ;;  %v130_v3 = vld [vmem:[#allocation5 + $0x178] sm:$0xff]  ;;  %v1564_v5 = vpack.c.bf16 %v125_v1, %v123_v0  ;;  %v127_v7 = vld [vmem:[#allocation5 + $0x160] sm:$0xff] }
  0x37   :  { %802 = vmatpush1.bf16.msra.mxu0 %v1508_v26  ;;  %866 = vmatpush1.bf16.msra.mxu1 %v1508_v26  ;;  %v1568_v6 = vpack.c.bf16 %v130_v3, %v128_v2  ;;  %v129_v10 = vld [vmem:[#allocation5 + $0x170] sm:$0xff]  ;;  %v132_v11 = vld [vmem:[#allocation5 + $0x188] sm:$0xff]  ;;  %v134_v12 = vld [vmem:[#allocation5 + $0x198] sm:$0xff] }
  0x38   :  { %804 = vmatprep.subr.bf16.mxu0 %v1512_v27  ;;  %868 = vmatprep.subr.bf16.mxu1 %v1512_v27  ;;  %v1574_v13 = vld [vmem:[%s1861_s1] ss:$0 sm:$0xff]  ;;  %v1577_v17 = vpack.c.bf16 %v129_v10, %v127_v7  ;;  %v1581_v18 = vpack.c.bf16 %v134_v12, %v132_v11  ;;  %v131_v19 = vld [vmem:[#allocation5 + $0x180] sm:$0xff]  ;;  %v133_v22 = vld [vmem:[#allocation5 + $0x190] sm:$0xff] }
  0x39   :  { %v76_v16 = vld [vmem:[#allocation2] sm:$0xff]  ;;  %v136_v23 = vld [vmem:[#allocation5 + $0x1a8] sm:$0xff]  ;;  %v1591_v29 = vpack.c.bf16 %v133_v22, %v131_v19  ;;  %v135_v31 = vld [vmem:[#allocation5 + $0x1a0] sm:$0xff] }
  0x3a   :  { %v138_v24 = vld [vmem:[#allocation5 + $0x1b8] sm:$0xff]  ;;  %v77_v25 = vmul.f32 %v1574_v13, %v76_v16  ;;  %v137_v34 = vld [vmem:[#allocation5 + $0x1b0] sm:$0xff]  ;;  %v140_v35 = vld [vmem:[#allocation5 + $0x1c8] sm:$0xff] }
  0x3b   :  { %806 = vmatpush1.bf16.msra.mxu0 %v1516_v32  ;;  %870 = vmatpush1.bf16.msra.mxu1 %v1516_v32  ;;  %v1588_v28 = vld [vmem:[%s1862_s2] ss:$0 sm:$0xff]  ;;  %v1595_v30 = vpack.c.bf16 %v138_v24, %v136_v23  ;;  %v1600_v40 = vpack.c.bf16 %v137_v34, %v135_v31  ;;  %v139_v42 = vld [vmem:[#allocation5 + $0x1c0] sm:$0xff]  ;;  %v141_v43 = vld [vmem:[#allocation5 + $0x1d0] sm:$0xff] }
  0x3c   :  { %808 = vmatprep.subr.bf16.mxu0 %v1520_v33  ;;  %872 = vmatprep.subr.bf16.mxu1 %v1520_v33  ;;  %v142_v36 = vld [vmem:[#allocation5 + $0x1d8] sm:$0xff]  ;;  %v78_v37 = vadd.f32 %v1588_v28, %v77_v25  ;;  %v144_v46 = vld [vmem:[#allocation5 + $0x1e8] sm:$0xff]  ;;  %v1608_v48 = vpack.c.bf16 %v141_v43, %v139_v42  ;;  %v143_v52 = vld [vmem:[#allocation5 + $0x1e0] sm:$0xff] }
  0x3d   :  { %v1604_v41 = vpack.c.bf16 %v142_v36, %v140_v35  ;;  %v146_v47 = vld [vmem:[#allocation5 + $0x1f8] sm:$0xff]  ;;  %v145_v53 = vld [vmem:[#allocation5 + $0x1f0] sm:$0xff]  ;;  %v80_v58 = vld [vmem:[#allocation2 + $0x8] sm:$0xff] }
  0x3e   :  { %1307 = vtanh.f32 %v78_v37  ;;  %v1612_v49 = vpack.c.bf16 %v146_v47, %v144_v46  ;;  %v1616_v54 = vpack.c.bf16 %v145_v53, %v143_v52  ;;  %v81_v59 = vmul.f32 %v1574_v13, %v80_v58  ;;  %v1662_v61 = vld [vmem:[%s1864_s4] ss:$0 sm:$0xff]  ;;  %v220_v11 = vld [vmem:[#allocation2 + $0x10] sm:$0xff]  ;;  %v296_v34 = vld [vmem:[#allocation2 + $0x18] sm:$0xff] }
  0x3f   :  { %810 = vmatpush1.bf16.msra.mxu0 %v1524_v38  ;;  %874 = vmatpush1.bf16.msra.mxu1 %v1524_v38  ;;  %v221_v12 = vmul.f32 %v1574_v13, %v220_v11  ;;  %v297_v35 = vmul.f32 %v1574_v13, %v296_v34  ;;  %v372_v53 = vld [vmem:[#allocation2 + $0x20] sm:$0xff] }
  0x40   :  { %812 = vmatprep.subr.bf16.mxu0 %v1528_v39  ;;  %876 = vmatprep.subr.bf16.mxu1 %v1528_v39  ;;  %v82_v60 = vadd.f32 %v1588_v28, %v81_v59 }
  0x41   :  { %v222_v16 = vadd.f32 %v1588_v28, %v221_v12  ;;  %v298_v36 = vadd.f32 %v1588_v28, %v297_v35 }
  0x43   :  { %814 = vmatpush1.bf16.msra.mxu0 %v1532_v44  ;;  %878 = vmatpush1.bf16.msra.mxu1 %v1532_v44 }
  0x44   :  { %816 = vmatprep.subr.bf16.mxu0 %v1536_v45  ;;  %880 = vmatprep.subr.bf16.mxu1 %v1536_v45 }
  0x47   :  { %818 = vmatpush1.bf16.msra.mxu0 %v1540_v50  ;;  %882 = vmatpush1.bf16.msra.mxu1 %v1540_v50 }
  0x48   :  { %820 = vmatprep.subr.bf16.mxu0 %v1544_v51  ;;  %884 = vmatprep.subr.bf16.mxu1 %v1544_v51  ;;  %v1308_v55 = vpop.eup %1307 }
  0x4b   :  { %822 = vmatpush1.bf16.msra.mxu0 %v1548_v56  ;;  %886 = vmatpush1.bf16.msra.mxu1 %v1548_v56 }
  0x4c   :  { %824 = vmatprep.subr.bf16.mxu0 %v1552_v57  ;;  %888 = vmatprep.subr.bf16.mxu1 %v1552_v57 }
  0x4f   :  { %826 = vmatpush1.bf16.msra.mxu0 %v1556_v62  ;;  %890 = vmatpush1.bf16.msra.mxu1 %v1556_v62 }
  0x50   :  { %828 = vmatprep.subr.bf16.mxu0 %v1560_v63  ;;  %892 = vmatprep.subr.bf16.mxu1 %v1560_v63 }
  0x53   :  { %830 = vmatpush1.bf16.msra.mxu0 %v1564_v5  ;;  %894 = vmatpush1.bf16.msra.mxu1 %v1564_v5 }
  0x54   :  { %832 = vmatprep.subr.bf16.mxu0 %v1568_v6  ;;  %896 = vmatprep.subr.bf16.mxu1 %v1568_v6 }
  0x57   :  { %834 = vmatpush1.bf16.msra.mxu0 %v1577_v17  ;;  %898 = vmatpush1.bf16.msra.mxu1 %v1577_v17 }
  0x58   :  { %836 = vmatprep.subr.bf16.mxu0 %v1581_v18  ;;  %900 = vmatprep.subr.bf16.mxu1 %v1581_v18 }
  0x5b   :  { %838 = vmatpush1.bf16.msra.mxu0 %v1591_v29  ;;  %902 = vmatpush1.bf16.msra.mxu1 %v1591_v29 }
  0x5c   :  { %840 = vmatprep.subr.bf16.mxu0 %v1595_v30  ;;  %904 = vmatprep.subr.bf16.mxu1 %v1595_v30 }
  0x5f   :  { %842 = vmatpush1.bf16.msra.mxu0 %v1600_v40  ;;  %906 = vmatpush1.bf16.msra.mxu1 %v1600_v40 }
  0x60   :  { %844 = vmatprep.subr.bf16.mxu0 %v1604_v41  ;;  %908 = vmatprep.subr.bf16.mxu1 %v1604_v41 }
  0x63   :  { %846 = vmatpush1.bf16.msra.mxu0 %v1608_v48  ;;  %910 = vmatpush1.bf16.msra.mxu1 %v1608_v48 }
  0x64   :  { %848 = vmatprep.subr.bf16.mxu0 %v1612_v49  ;;  %912 = vmatprep.subr.bf16.mxu1 %v1612_v49 }
  0x67   :  { %850 = vmatpush1.bf16.msra.mxu0 %v1616_v54  ;;  %914 = vmatpush1.bf16.msra.mxu1 %v1616_v54 }
  0x68   :  { %916 = vmatprep.subr.bf16.mxu0 %v1483_v4  ;;  %980 = vmatprep.subr.bf16.mxu1 %v1483_v4 }
  0x6a   :  { %212 = vmatmul.mubr.f32.vlgmr.msra.gmra.mrb[0].mxu0 %v1308_v55  ;;  %v373_v55 = vmul.f32 %v1574_v13, %v372_v53 }
  0x6b   :  { %918 = vmatpush1.bf16.msra.mxu0 %v1485_v8 }
  0x6c   :  { %920 = vmatprep.subr.bf16.mxu0 %v1487_v9  ;;  %v374_v58 = vadd.f32 %v1588_v28, %v373_v55 }
  0x6f   :  { %922 = vmatpush1.bf16.msra.mxu0 %v1492_v14 }
  0x70   :  { %924 = vmatprep.subr.bf16.mxu0 %v1496_v15 }
  0x73   :  { %926 = vmatpush1.bf16.msra.mxu0 %v1500_v20 }
  0x74   :  { %928 = vmatprep.subr.bf16.mxu0 %v1504_v21 }
  0x77   :  { %930 = vmatpush1.bf16.msra.mxu0 %v1508_v26 }
  0x78   :  { %932 = vmatprep.subr.bf16.mxu0 %v1512_v27 }
  0x7b   :  { %934 = vmatpush1.bf16.msra.mxu0 %v1516_v32 }
  0x7c   :  { %936 = vmatprep.subr.bf16.mxu0 %v1520_v33 }
  0x7f   :  { %938 = vmatpush1.bf16.msra.mxu0 %v1524_v38 }
  0x80   :  { %940 = vmatprep.subr.bf16.mxu0 %v1528_v39 }
  0x83   :  { %942 = vmatpush1.bf16.msra.mxu0 %v1532_v44 }
  0x84   :  { %944 = vmatprep.subr.bf16.mxu0 %v1536_v45 }
  0x87   :  { %946 = vmatpush1.bf16.msra.mxu0 %v1540_v50 }
  0x88   :  { %948 = vmatprep.subr.bf16.mxu0 %v1544_v51 }
  0x8b   :  { %950 = vmatpush1.bf16.msra.mxu0 %v1548_v56 }
  0x8c   :  { %952 = vmatprep.subr.bf16.mxu0 %v1552_v57 }
  0x8f   :  { %954 = vmatpush1.bf16.msra.mxu0 %v1556_v62 }
  0x90   :  { %956 = vmatprep.subr.bf16.mxu0 %v1560_v63 }
  0x93   :  { %958 = vmatpush1.bf16.msra.mxu0 %v1564_v5 }
  0x94   :  { %960 = vmatprep.subr.bf16.mxu0 %v1568_v6 }
  0x97   :  { %962 = vmatpush1.bf16.msra.mxu0 %v1577_v17 }
  0x98   :  { %964 = vmatprep.subr.bf16.mxu0 %v1581_v18 }
  0x9b   :  { %966 = vmatpush1.bf16.msra.mxu0 %v1591_v29 }
  0x9c   :  { %968 = vmatprep.subr.bf16.mxu0 %v1595_v30 }
  0x9f   :  { %970 = vmatpush1.bf16.msra.mxu0 %v1600_v40 }
  0xa0   :  { %972 = vmatprep.subr.bf16.mxu0 %v1604_v41 }
  0xa3   :  { %974 = vmatpush1.bf16.msra.mxu0 %v1608_v48 }
  0xa4   :  { %976 = vmatprep.subr.bf16.mxu0 %v1612_v49 }
  0xa7   :  { %978 = vmatpush1.bf16.msra.mxu0 %v1616_v54 }
  0xa8   :  { %1044 = vmatprep.subr.bf16.mxu0 %v1483_v4 }
 0x13d   :  { %v213_v0 = vpop.f32.mrb[0].mxu0 }
 0x13e   :  { %v214_v1 = vadd.f32 %v213_v0, %v82_v60  ;;  %v215_v2 = vpop.f32.mrb[1].mxu0 }
 0x13f   :  { %v216_v3 = vadd.f32 %v1662_v61, %v215_v2 }
 0x141   :  { %1309 = vtanh.f32 %v216_v3 }
 0x142   :  { %1311 = vtanh.f32 %v214_v1 }
 0x14b   :  { %v1310_v7 = vpop.eup %1309 }
 0x14c   :  { %v1312_v10 = vpop.eup %1311  ;;  %287 = vmatprep.mubr.f32.mxu1 %v1310_v7 }
 0x14d   :  { %288 = vmatmul.mubr.f32.vlgmr.msra.gmra.mrb[0].mxu1 %v1312_v10 }
 0x14e   :  { %982 = vmatpush1.bf16.msra.mxu1 %v1485_v8 }
 0x14f   :  { %984 = vmatprep.subr.bf16.mxu1 %v1487_v9 }
 0x152   :  { %986 = vmatpush1.bf16.msra.mxu1 %v1492_v14 }
 0x153   :  { %988 = vmatprep.subr.bf16.mxu1 %v1496_v15 }
 0x156   :  { %990 = vmatpush1.bf16.msra.mxu1 %v1500_v20 }
 0x157   :  { %992 = vmatprep.subr.bf16.mxu1 %v1504_v21 }
 0x15a   :  { %994 = vmatpush1.bf16.msra.mxu1 %v1508_v26 }
 0x15b   :  { %996 = vmatprep.subr.bf16.mxu1 %v1512_v27 }
 0x15e   :  { %998 = vmatpush1.bf16.msra.mxu1 %v1516_v32 }
 0x15f   :  { %1000 = vmatprep.subr.bf16.mxu1 %v1520_v33 }
 0x162   :  { %1002 = vmatpush1.bf16.msra.mxu1 %v1524_v38 }
 0x163   :  { %1004 = vmatprep.subr.bf16.mxu1 %v1528_v39 }
 0x166   :  { %1006 = vmatpush1.bf16.msra.mxu1 %v1532_v44 }
 0x167   :  { %1008 = vmatprep.subr.bf16.mxu1 %v1536_v45 }
 0x16a   :  { %1010 = vmatpush1.bf16.msra.mxu1 %v1540_v50 }
 0x16b   :  { %1012 = vmatprep.subr.bf16.mxu1 %v1544_v51 }
 0x16e   :  { %1014 = vmatpush1.bf16.msra.mxu1 %v1548_v56 }
 0x16f   :  { %1016 = vmatprep.subr.bf16.mxu1 %v1552_v57 }
 0x172   :  { %1018 = vmatpush1.bf16.msra.mxu1 %v1556_v62 }
 0x173   :  { %1020 = vmatprep.subr.bf16.mxu1 %v1560_v63 }
 0x176   :  { %1022 = vmatpush1.bf16.msra.mxu1 %v1564_v5 }
 0x177   :  { %1024 = vmatprep.subr.bf16.mxu1 %v1568_v6 }
 0x17a   :  { %1026 = vmatpush1.bf16.msra.mxu1 %v1577_v17 }
 0x17b   :  { %1028 = vmatprep.subr.bf16.mxu1 %v1581_v18 }
 0x17e   :  { %1030 = vmatpush1.bf16.msra.mxu1 %v1591_v29 }
 0x17f   :  { %1032 = vmatprep.subr.bf16.mxu1 %v1595_v30 }
 0x182   :  { %1034 = vmatpush1.bf16.msra.mxu1 %v1600_v40 }
 0x183   :  { %1036 = vmatprep.subr.bf16.mxu1 %v1604_v41 }
 0x186   :  { %1038 = vmatpush1.bf16.msra.mxu1 %v1608_v48 }
 0x187   :  { %1040 = vmatprep.subr.bf16.mxu1 %v1612_v49 }
 0x18a   :  { %1042 = vmatpush1.bf16.msra.mxu1 %v1616_v54 }
 0x18b   :  { %1108 = vmatprep.subr.bf16.mxu1 %v1483_v4 }
 0x220   :  { %v289_v19 = vpop.f32.mrb[0].mxu1 }
 0x221   :  { %v290_v22 = vadd.f32 %v289_v19, %v222_v16  ;;  %v291_v23 = vpop.f32.mrb[1].mxu1 }
 0x222   :  { %v292_v24 = vadd.f32 %v1662_v61, %v291_v23 }
 0x224   :  { %1313 = vtanh.f32 %v292_v24 }
 0x225   :  { %1315 = vtanh.f32 %v290_v22 }
 0x22e   :  { %v1314_v25 = vpop.eup %1313 }
 0x22f   :  { %v1316_v31 = vpop.eup %1315  ;;  %363 = vmatprep.mubr.f32.mxu0 %v1314_v25 }
 0x230   :  { %364 = vmatmul.mubr.f32.vlgmr.msra.gmra.mrb[2].mxu0 %v1316_v31 }
 0x231   :  { %1046 = vmatpush1.bf16.msra.mxu0 %v1485_v8 }
 0x232   :  { %1048 = vmatprep.subr.bf16.mxu0 %v1487_v9 }
 0x235   :  { %1050 = vmatpush1.bf16.msra.mxu0 %v1492_v14 }
 0x236   :  { %1052 = vmatprep.subr.bf16.mxu0 %v1496_v15 }
 0x239   :  { %1054 = vmatpush1.bf16.msra.mxu0 %v1500_v20 }
 0x23a   :  { %1056 = vmatprep.subr.bf16.mxu0 %v1504_v21 }
 0x23d   :  { %1058 = vmatpush1.bf16.msra.mxu0 %v1508_v26 }
 0x23e   :  { %1060 = vmatprep.subr.bf16.mxu0 %v1512_v27 }
 0x241   :  { %1062 = vmatpush1.bf16.msra.mxu0 %v1516_v32 }
 0x242   :  { %1064 = vmatprep.subr.bf16.mxu0 %v1520_v33 }
 0x245   :  { %1066 = vmatpush1.bf16.msra.mxu0 %v1524_v38 }
 0x246   :  { %1068 = vmatprep.subr.bf16.mxu0 %v1528_v39 }
 0x249   :  { %1070 = vmatpush1.bf16.msra.mxu0 %v1532_v44 }
 0x24a   :  { %1072 = vmatprep.subr.bf16.mxu0 %v1536_v45 }
 0x24d   :  { %1074 = vmatpush1.bf16.msra.mxu0 %v1540_v50 }
 0x24e   :  { %1076 = vmatprep.subr.bf16.mxu0 %v1544_v51 }
 0x251   :  { %1078 = vmatpush1.bf16.msra.mxu0 %v1548_v56 }
 0x252   :  { %1080 = vmatprep.subr.bf16.mxu0 %v1552_v57 }
 0x255   :  { %1082 = vmatpush1.bf16.msra.mxu0 %v1556_v62 }
 0x256   :  { %1084 = vmatprep.subr.bf16.mxu0 %v1560_v63 }
 0x259   :  { %1086 = vmatpush1.bf16.msra.mxu0 %v1564_v5 }
 0x25a   :  { %1088 = vmatprep.subr.bf16.mxu0 %v1568_v6 }
 0x25d   :  { %1090 = vmatpush1.bf16.msra.mxu0 %v1577_v17 }
 0x25e   :  { %1092 = vmatprep.subr.bf16.mxu0 %v1581_v18 }
 0x261   :  { %1094 = vmatpush1.bf16.msra.mxu0 %v1591_v29 }
 0x262   :  { %1096 = vmatprep.subr.bf16.mxu0 %v1595_v30 }
 0x265   :  { %1098 = vmatpush1.bf16.msra.mxu0 %v1600_v40 }
 0x266   :  { %1100 = vmatprep.subr.bf16.mxu0 %v1604_v41 }
 0x269   :  { %1102 = vmatpush1.bf16.msra.mxu0 %v1608_v48 }
 0x26a   :  { %1104 = vmatprep.subr.bf16.mxu0 %v1612_v49 }
 0x26d   :  { %1106 = vmatpush1.bf16.msra.mxu0 %v1616_v54 }
 0x26e   :  { %1172 = vmatprep.subr.bf16.mxu0 %v1483_v4 }
 0x303   :  { %v365_v37 = vpop.f32.mrb[2].mxu0 }
 0x304   :  { %v366_v42 = vadd.f32 %v365_v37, %v298_v36  ;;  %v367_v43 = vpop.f32.mrb[3].mxu0 }
 0x305   :  { %v368_v46 = vadd.f32 %v1662_v61, %v367_v43 }
 0x307   :  { %1317 = vtanh.f32 %v368_v46 }
 0x308   :  { %1319 = vtanh.f32 %v366_v42 }
 0x311   :  { %v1318_v47 = vpop.eup %1317 }
 0x312   :  { %v1320_v52 = vpop.eup %1319  ;;  %439 = vmatprep.mubr.f32.mxu1 %v1318_v47 }
 0x313   :  { %440 = vmatmul.mubr.f32.vlgmr.msra.gmra.mrb[2].mxu1 %v1320_v52 }
 0x314   :  { %1110 = vmatpush1.bf16.msra.mxu1 %v1485_v8 }
 0x315   :  { %1112 = vmatprep.subr.bf16.mxu1 %v1487_v9 }
 0x318   :  { %1114 = vmatpush1.bf16.msra.mxu1 %v1492_v14 }
 0x319   :  { %1116 = vmatprep.subr.bf16.mxu1 %v1496_v15 }
 0x31c   :  { %1118 = vmatpush1.bf16.msra.mxu1 %v1500_v20 }
 0x31d   :  { %1120 = vmatprep.subr.bf16.mxu1 %v1504_v21 }
 0x320   :  { %1122 = vmatpush1.bf16.msra.mxu1 %v1508_v26 }
 0x321   :  { %1124 = vmatprep.subr.bf16.mxu1 %v1512_v27 }
 0x324   :  { %1126 = vmatpush1.bf16.msra.mxu1 %v1516_v32 }
 0x325   :  { %1128 = vmatprep.subr.bf16.mxu1 %v1520_v33 }
 0x328   :  { %1130 = vmatpush1.bf16.msra.mxu1 %v1524_v38 }
 0x329   :  { %1132 = vmatprep.subr.bf16.mxu1 %v1528_v39 }
 0x32c   :  { %1134 = vmatpush1.bf16.msra.mxu1 %v1532_v44 }
 0x32d   :  { %1136 = vmatprep.subr.bf16.mxu1 %v1536_v45 }
 0x330   :  { %1138 = vmatpush1.bf16.msra.mxu1 %v1540_v50 }
 0x331   :  { %1140 = vmatprep.subr.bf16.mxu1 %v1544_v51 }
 0x334   :  { %1142 = vmatpush1.bf16.msra.mxu1 %v1548_v56 }
 0x335   :  { %1144 = vmatprep.subr.bf16.mxu1 %v1552_v57 }
 0x338   :  { %1146 = vmatpush1.bf16.msra.mxu1 %v1556_v62 }
 0x339   :  { %1148 = vmatprep.subr.bf16.mxu1 %v1560_v63 }
 0x33c   :  { %1150 = vmatpush1.bf16.msra.mxu1 %v1564_v5 }
 0x33d   :  { %1152 = vmatprep.subr.bf16.mxu1 %v1568_v6 }
 0x340   :  { %1154 = vmatpush1.bf16.msra.mxu1 %v1577_v17 }
 0x341   :  { %1156 = vmatprep.subr.bf16.mxu1 %v1581_v18 }
 0x344   :  { %1158 = vmatpush1.bf16.msra.mxu1 %v1591_v29 }
 0x345   :  { %1160 = vmatprep.subr.bf16.mxu1 %v1595_v30 }
 0x348   :  { %1162 = vmatpush1.bf16.msra.mxu1 %v1600_v40 }
 0x349   :  { %1164 = vmatprep.subr.bf16.mxu1 %v1604_v41 }
 0x34c   :  { %1166 = vmatpush1.bf16.msra.mxu1 %v1608_v48 }
 0x34d   :  { %1168 = vmatprep.subr.bf16.mxu1 %v1612_v49 }
 0x350   :  { %1170 = vmatpush1.bf16.msra.mxu1 %v1616_v54 }
 0x351   :  { %1236 = vmatprep.subr.bf16.mxu1 %v1483_v4  ;;  %v448_v4 = vld [vmem:[#allocation2 + $0x28] sm:$0xff] }
 0x352   :  { %v449_v7 = vmul.f32 %v1574_v13, %v448_v4 }
 0x354   :  { %v450_v10 = vadd.f32 %v1588_v28, %v449_v7 }
 0x3e6   :  { %v441_v59 = vpop.f32.mrb[2].mxu1 }
 0x3e7   :  { %v442_v60 = vadd.f32 %v441_v59, %v374_v58  ;;  %v443_v0 = vpop.f32.mrb[3].mxu1 }
 0x3e8   :  { %v444_v1 = vadd.f32 %v1662_v61, %v443_v0 }
 0x3ea   :  { %1321 = vtanh.f32 %v444_v1 }
 0x3eb   :  { %1323 = vtanh.f32 %v442_v60 }
 0x3f4   :  { %v1322_v2 = vpop.eup %1321 }
 0x3f5   :  { %v1324_v3 = vpop.eup %1323  ;;  %515 = vmatprep.mubr.f32.mxu0 %v1322_v2 }
 0x3f6   :  { %516 = vmatmul.mubr.f32.vlgmr.msra.gmra.mrb[4].mxu0 %v1324_v3 }
 0x3f7   :  { %1174 = vmatpush1.bf16.msra.mxu0 %v1485_v8 }
 0x3f8   :  { %1176 = vmatprep.subr.bf16.mxu0 %v1487_v9 }
 0x3fb   :  { %1178 = vmatpush1.bf16.msra.mxu0 %v1492_v14 }
 0x3fc   :  { %1180 = vmatprep.subr.bf16.mxu0 %v1496_v15 }
 0x3ff   :  { %1182 = vmatpush1.bf16.msra.mxu0 %v1500_v20 }
 0x400   :  { %1184 = vmatprep.subr.bf16.mxu0 %v1504_v21 }
 0x403   :  { %1186 = vmatpush1.bf16.msra.mxu0 %v1508_v26 }
 0x404   :  { %1188 = vmatprep.subr.bf16.mxu0 %v1512_v27 }
 0x407   :  { %1190 = vmatpush1.bf16.msra.mxu0 %v1516_v32 }
 0x408   :  { %1192 = vmatprep.subr.bf16.mxu0 %v1520_v33 }
 0x40b   :  { %1194 = vmatpush1.bf16.msra.mxu0 %v1524_v38 }
 0x40c   :  { %1196 = vmatprep.subr.bf16.mxu0 %v1528_v39 }
 0x40f   :  { %1198 = vmatpush1.bf16.msra.mxu0 %v1532_v44 }
 0x410   :  { %1200 = vmatprep.subr.bf16.mxu0 %v1536_v45 }
 0x413   :  { %1202 = vmatpush1.bf16.msra.mxu0 %v1540_v50 }
 0x414   :  { %1204 = vmatprep.subr.bf16.mxu0 %v1544_v51 }
 0x417   :  { %1206 = vmatpush1.bf16.msra.mxu0 %v1548_v56 }
 0x418   :  { %1208 = vmatprep.subr.bf16.mxu0 %v1552_v57 }
 0x41b   :  { %1210 = vmatpush1.bf16.msra.mxu0 %v1556_v62 }
 0x41c   :  { %1212 = vmatprep.subr.bf16.mxu0 %v1560_v63 }
 0x41f   :  { %1214 = vmatpush1.bf16.msra.mxu0 %v1564_v5 }
 0x420   :  { %1216 = vmatprep.subr.bf16.mxu0 %v1568_v6 }
 0x423   :  { %1218 = vmatpush1.bf16.msra.mxu0 %v1577_v17 }
 0x424   :  { %1220 = vmatprep.subr.bf16.mxu0 %v1581_v18 }
 0x427   :  { %1222 = vmatpush1.bf16.msra.mxu0 %v1591_v29 }
 0x428   :  { %1224 = vmatprep.subr.bf16.mxu0 %v1595_v30 }
 0x42b   :  { %1226 = vmatpush1.bf16.msra.mxu0 %v1600_v40 }
 0x42c   :  { %1228 = vmatprep.subr.bf16.mxu0 %v1604_v41 }
 0x42f   :  { %1230 = vmatpush1.bf16.msra.mxu0 %v1608_v48 }
 0x430   :  { %1232 = vmatprep.subr.bf16.mxu0 %v1612_v49 }
 0x433   :  { %1234 = vmatpush1.bf16.msra.mxu0 %v1616_v54 }
 0x4c9   :  { %v517_v11 = vpop.f32.mrb[4].mxu0 }
 0x4ca   :  { %v518_v12 = vadd.f32 %v517_v11, %v450_v10  ;;  %v519_v16 = vpop.f32.mrb[5].mxu0 }
 0x4cb   :  { %v520_v19 = vadd.f32 %v1662_v61, %v519_v16 }
 0x4cd   :  { %1325 = vtanh.f32 %v520_v19 }
 0x4ce   :  { %1327 = vtanh.f32 %v518_v12 }
 0x4d7   :  { %v1326_v22 = vpop.eup %1325 }
 0x4d8   :  { %v1328_v23 = vpop.eup %1327  ;;  %591 = vmatprep.mubr.f32.mxu1 %v1326_v22 }
 0x4d9   :  { %592 = vmatmul.mubr.f32.vlgmr.msra.gmra.mrb[4].mxu1 %v1328_v23 }
 0x4da   :  { %1238 = vmatpush1.bf16.msra.mxu1 %v1485_v8  ;;  %v524_v8 = vld [vmem:[#allocation2 + $0x30] sm:$0xff] }
 0x4db   :  { %1240 = vmatprep.subr.bf16.mxu1 %v1487_v9  ;;  %v525_v9 = vmul.f32 %v1574_v13, %v524_v8 }
 0x4de   :  { %1242 = vmatpush1.bf16.msra.mxu1 %v1492_v14  ;;  %v526_v14 = vadd.f32 %v1588_v28, %v525_v9 }
 0x4df   :  { %1244 = vmatprep.subr.bf16.mxu1 %v1496_v15 }
 0x4e2   :  { %1246 = vmatpush1.bf16.msra.mxu1 %v1500_v20 }
 0x4e3   :  { %1248 = vmatprep.subr.bf16.mxu1 %v1504_v21 }
 0x4e6   :  { %1250 = vmatpush1.bf16.msra.mxu1 %v1508_v26 }
 0x4e7   :  { %1252 = vmatprep.subr.bf16.mxu1 %v1512_v27 }
 0x4ea   :  { %1254 = vmatpush1.bf16.msra.mxu1 %v1516_v32 }
 0x4eb   :  { %1256 = vmatprep.subr.bf16.mxu1 %v1520_v33  ;;  %v600_v33 = vld [vmem:[#allocation2 + $0x38] sm:$0xff] }
 0x4ee   :  { %1258 = vmatpush1.bf16.msra.mxu1 %v1524_v38  ;;  %v601_v38 = vmul.f32 %v1574_v13, %v600_v33 }
 0x4ef   :  { %1260 = vmatprep.subr.bf16.mxu1 %v1528_v39 }
 0x4f0   :  { %v602_v39 = vadd.f32 %v1588_v28, %v601_v38 }
 0x4f2   :  { %1262 = vmatpush1.bf16.msra.mxu1 %v1532_v44 }
 0x4f3   :  { %1264 = vmatprep.subr.bf16.mxu1 %v1536_v45 }
 0x4f6   :  { %1266 = vmatpush1.bf16.msra.mxu1 %v1540_v50 }
 0x4f7   :  { %1268 = vmatprep.subr.bf16.mxu1 %v1544_v51 }
 0x4fa   :  { %1270 = vmatpush1.bf16.msra.mxu1 %v1548_v56 }
 0x4fb   :  { %1272 = vmatprep.subr.bf16.mxu1 %v1552_v57 }
 0x4fe   :  { %1274 = vmatpush1.bf16.msra.mxu1 %v1556_v62 }
 0x4ff   :  { %1276 = vmatprep.subr.bf16.mxu1 %v1560_v63 }
 0x502   :  { %1278 = vmatpush1.bf16.msra.mxu1 %v1564_v5 }
 0x503   :  { %1280 = vmatprep.subr.bf16.mxu1 %v1568_v6  ;;  %v785_v6 = vld [vmem:[%s1865_s5] ss:$0 sm:$0xff] }
 0x506   :  { %1282 = vmatpush1.bf16.msra.mxu1 %v1577_v17 }
 0x507   :  { %1284 = vmatprep.subr.bf16.mxu1 %v1581_v18  ;;  %v786_v18 = vld [vmem:[%s1866_s6] ss:$0 sm:$0xff] }
 0x50a   :  { %1286 = vmatpush1.bf16.msra.mxu1 %v1591_v29 }
 0x50b   :  { %1288 = vmatprep.subr.bf16.mxu1 %v1595_v30 }
 0x50e   :  { %1290 = vmatpush1.bf16.msra.mxu1 %v1600_v40 }
 0x50f   :  { %1292 = vmatprep.subr.bf16.mxu1 %v1604_v41 }
 0x512   :  { %1294 = vmatpush1.bf16.msra.mxu1 %v1608_v48 }
 0x513   :  { %1296 = vmatprep.subr.bf16.mxu1 %v1612_v49 }
 0x516   :  { %1298 = vmatpush1.bf16.msra.mxu1 %v1616_v54 }
 0x5ac   :  { %v593_v15 = vpop.f32.mrb[4].mxu1 }
 0x5ad   :  { %v594_v20 = vadd.f32 %v593_v15, %v526_v14  ;;  %v595_v21 = vpop.f32.mrb[5].mxu1 }
 0x5ae   :  { %v596_v26 = vadd.f32 %v1662_v61, %v595_v21 }
 0x5b0   :  { %1329 = vtanh.f32 %v596_v26 }
 0x5b1   :  { %1331 = vtanh.f32 %v594_v20 }
 0x5ba   :  { %v1330_v27 = vpop.eup %1329 }
 0x5bb   :  { %v1332_v32 = vpop.eup %1331  ;;  %667 = vmatprep.mubr.f32.mxu0 %v1330_v27 }
 0x5bc   :  { %668 = vmatmul.mubr.f32.vlgmr.msra.gmra.mrb[6].mxu0 %v1332_v32 }
 0x68f   :  { %v669_v44 = vpop.f32.mrb[6].mxu0 }
 0x690   :  { %v670_v45 = vadd.f32 %v669_v44, %v602_v39  ;;  %v671_v50 = vpop.f32.mrb[7].mxu0 }
 0x691   :  { %v672_v51 = vadd.f32 %v1662_v61, %v671_v50 }
 0x693   :  { %1333 = vtanh.f32 %v672_v51 }
 0x694   :  { %1335 = vtanh.f32 %v670_v45 }
 0x69d   :  { %v1334_v56 = vpop.eup %1333 }
 0x69e   :  { %v1336_v57 = vpop.eup %1335  ;;  %740 = vmatprep.mubr.f32.mxu1 %v1334_v56 }
 0x69f   :  { %741 = vmatmul.mubr.f32.vlgmr.msra.gmra.mrb[6].mxu1 %v1336_v57 }
 0x772   :  { %v742_v62 = vpop.f32.mrb[6].mxu1 }
 0x773   :  { %v743_v63 = vpop.f32.mrb[7].mxu1 }
 0x774   :  { %v744_v5 = vadd.f32 %v1662_v61, %v743_v63 }
 0x776   :  { %1337 = vtanh.f32 %v744_v5 }
 0x780   :  { %v1338_v13 = vpop.eup %1337 }
 0x781   :  { %v754_v17 = vmul.f32 %v1338_v13, %v785_v6 }
 0x783   :  { %755 = vadd.xlane.f32.xlu0 %v754_v17 }
 0x810   :  { %v756_v28 = vpop.xlane.xlu0 %755 }
 0x811   :  { %v764_v29 = vadd.f32 %v786_v18, %v756_v28 }
 0x813   :  { %765 = vst [vmem:[#allocation7] sm:$0xff] %v764_v29 }
 0x814   :  { %1394 = shalt.err (!%p1391_p6)
}
 0x815   :  { %s1395_s15 = scalar_lea.hbm %s1867_s7, 128 }
 0x816   :  { %p1396_p7 = scmp.ne.s32.totalorder %s1867_s7, %s1395_s15  ;;  %p1399_p8 = scmp.lt.u32.totalorder %s1395_s15, %s1867_s7 }
 0x818   :  { %p1401_p9 = pnand %p1399_p8, %p1396_p7 }
 0x81a   :  { %1404 = shalt.err (!%p1401_p9)
}
 0x81b   :  { %775 = dma.vmem_to_hbm [thread:$0]  %s773_s12, 128, %s1867_s7, [#allocation4]  }
 0x81c   :  { %1409 = dma.done.wait [#allocation4], 128  }
 0x81d   :  { %1410 = vsyncadd [#allocation4], 4294967168 }
 0x81e   :  { %779 = vsyncpa [#allocation3], 1 }
 0x81f   :  { %780 = vsyncpa [#allocation6], 1 }
 0x820   :  { %781 = vsyncpa [#allocation4], 1 }

</bundles_post_ra>
